<compile_context>
chip_gen: v5e
topology: v5e:2x2
jax: 0.10.0
libtpu: 0.0.40
codegen_flags: <defaults>
</compile_context>

<pallas_src>
import jax
import jax.numpy as jnp
from jax import lax
from jax.experimental import pallas as pl
from jax.experimental.pallas import tpu as pltpu


# ---------------------------------------------------------------------------
# Fused kernel: one image per grid step, all intermediates stay in VMEM,
# everything channel-first (C, H*W) with the spatial dim on the lanes.
# ---------------------------------------------------------------------------
def _make_kernel(H, W):
    HW = H * W

    def kernel(x_ref, y_ref, masks_ref, w1_ref, b1_ref, wr_ref, br_ref,
               w2_ref, b2_ref, w3_ref, b3_ref, o_ref):
        x = x_ref[0]                  # (Cin, HW)  lane-dense
        y = y_ref[0]                  # (Cin, HW)
        masks = masks_ref[...]        # (18, HW): rows 0..8 dil=1, 9..17 dil=8

        def conv3x3(inp, wmat, mask_stack, dil):
            # 3x3 conv (padding = dilation) as im2col: 9 static lane rolls
            # + border masks, stacked into (9*C, HW), one K=9*C matmul.
            patches = []
            for ky in range(3):
                for kx in range(3):
                    k = ky * 3 + kx
                    dy = (ky - 1) * dil
                    dx = (kx - 1) * dil
                    if dy == 0 and dx == 0:
                        patches.append(inp)           # center tap: no shift
                        continue
                    off = dy * W + dx                 # flat-index offset
                    # want patch[i] = inp[i + off]  ->  jnp.roll shift = -off
                    shifted = pltpu.roll(inp, shift=(-off) % HW, axis=1)
                    patches.append(shifted * mask_stack[k:k + 1, :])
            pat = jnp.concatenate(patches, axis=0)    # (9*C, HW)
            return jnp.dot(wmat, pat, preferred_element_type=jnp.float32)

        # --- conv1: 1x1 (BN scale folded) + bias -----------------------------
        x1 = jnp.dot(w1_ref[...], x,
                     preferred_element_type=jnp.float32) + b1_ref[...]

        # --- residual branch: sigmoid(conv3x3_d1(y) + bias) * y --------------
        r_pre = conv3x3(y, wr_ref[...], masks[0:9, :], 1)
        r = jax.nn.sigmoid(r_pre + br_ref[...]) * y

        # --- conv2: 3x3, dilation 8 (BN scale folded) + bias -----------------
        x2 = conv3x3(x1 + r, w2_ref[...], masks[9:18, :], 8) + b2_ref[...]

        # --- skip + conv3: 1x1, lane-dense channel-first output --------------
        x3 = x1 + x2
        x4 = jnp.dot(w3_ref[...], x3,
                     preferred_element_type=jnp.float32) + b3_ref[...]
        o_ref[0] = x4.astype(o_ref.dtype)

    return kernel


# ---------------------------------------------------------------------------
# Host-side helpers
# ---------------------------------------------------------------------------
def _fold_bn(bn, eps=1e-5):
    scale = bn["gamma"] / jnp.sqrt(bn["var"] + eps)
    bias = bn["beta"] - bn["mean"] * scale
    return scale, bias


def _border_masks(H, W, dil):
    """(9, H*W) f32 masks: 1 where the tap's source pixel is inside the image."""
    h = jnp.arange(H).reshape(H, 1)
    w = jnp.arange(W).reshape(1, W)
    rows = []
    for ky in range(3):
        for kx in range(3):
            dy = (ky - 1) * dil
            dx = (kx - 1) * dil
            valid = ((h + dy >= 0) & (h + dy < H) &
                     (w + dx >= 0) & (w + dx < W))
            rows.append(valid.reshape(1, H * W))
    return jnp.concatenate(rows, axis=0).astype(jnp.float32)


def tdc3x3_8_forward(x_nchw, y_nchw, params):
    x = x_nchw.astype(jnp.float32)
    y = y_nchw.astype(jnp.float32)
    N, Cin, H, W = x.shape
    HW = H * W                                    # multiple of 128 at test sizes

    s1, b1 = _fold_bn(params["conv1"]["bn"])
    sr, br = _fold_bn(params["residual"]["bn"])
    s2, b2 = _fold_bn(params["conv2"]["bn"])
    s3, b3 = _fold_bn(params["conv3"]["bn"])

    # fold BN scale into conv weights and lay them out for (Cout, K) @ (K, HW)
    w1t = (params["conv1"]["w"][0, 0] * s1).T                        # (Cout, Cin)
    Cout = w1t.shape[0]
    wr_m = jnp.transpose(params["residual"]["w"] * sr,
                         (3, 0, 1, 2)).reshape(Cout, 9 * Cin)        # (Cout, 9*Cin)
    w2_m = jnp.transpose(params["conv2"]["w"] * s2,
                         (3, 0, 1, 2)).reshape(Cout, 9 * Cout)       # (Cout, 9*Cout)
    w3t = (params["conv3"]["w"][0, 0] * s3).T                        # (Cout, Cout)

    b1 = b1.reshape(Cout, 1)
    br = br.reshape(Cout, 1)
    b2 = b2.reshape(Cout, 1)
    b3 = b3.reshape(Cout, 1)

    # Border masks for the two 3x3 convs (dilation 1 and 8) — tiny constants.
    masks = jnp.concatenate([_border_masks(H, W, 1),
                             _border_masks(H, W, 8)], axis=0)        # (18, HW)

    # NCHW -> (N, C, HW) is a free view reshape; no transpose / pad on host.
    xf = x.reshape(N, Cin, HW)
    yf = y.reshape(N, Cin, HW)

    kernel = _make_kernel(H, W)

    def _wspec(shape):
        return pl.BlockSpec(shape, lambda n: (0,) * len(shape))

    out = pl.pallas_call(
        kernel,
        grid=(N,),
        in_specs=[
            pl.BlockSpec((1, Cin, HW), lambda n: (n, 0, 0)),    # x
            pl.BlockSpec((1, Cin, HW), lambda n: (n, 0, 0)),    # y
            _wspec((18, HW)),                                   # border masks
            _wspec((Cout, Cin)),                                # w1^T
            _wspec((Cout, 1)),                                  # b1
            _wspec((Cout, 9 * Cin)),                            # wr (im2col)
            _wspec((Cout, 1)),                                  # br
            _wspec((Cout, 9 * Cout)),                           # w2 (im2col)
            _wspec((Cout, 1)),                                  # b2
            _wspec((Cout, Cout)),                               # w3^T
            _wspec((Cout, 1)),                                  # b3
        ],
        out_specs=pl.BlockSpec((1, Cout, HW), lambda n: (n, 0, 0)),
        out_shape=jax.ShapeDtypeStruct((N, Cout, HW), jnp.float32),
        compiler_params=pltpu.CompilerParams(dimension_semantics=("parallel",)),
    )(xf, yf, masks, w1t, b1, wr_m, br, w2_m, b2, w3t, b3)

    return out.reshape(N, Cout, H, W)             # channel-first already


# ---------------------------------------------------------------------------
# Deterministic parameter construction (synthetic, no checkpoint)
# ---------------------------------------------------------------------------
def init_params(key, cin, cout):
    ks = jax.random.split(key, 8)

    def conv_w(k, kh, kw, ci, co):
        return jax.random.normal(k, (kh, kw, ci, co), jnp.float32) / jnp.sqrt(ci * kh * kw)

    def bn(k, c):
        kg, kb, km, kv = jax.random.split(k, 4)
        return dict(
            gamma=1.0 + 0.1 * jax.random.normal(kg, (c,), jnp.float32),
            beta=0.1 * jax.random.normal(kb, (c,), jnp.float32),
            mean=0.1 * jax.random.normal(km, (c,), jnp.float32),
            var=jnp.abs(jax.random.normal(kv, (c,), jnp.float32)) + 0.5)

    return dict(
        conv1=dict(w=conv_w(ks[0], 1, 1, cin, cout), bn=bn(ks[1], cout)),
        residual=dict(w=conv_w(ks[2], 3, 3, cin, cout), bn=bn(ks[3], cout)),
        conv2=dict(w=conv_w(ks[4], 3, 3, cout, cout), bn=bn(ks[5], cout)),
        conv3=dict(w=conv_w(ks[6], 1, 1, cout, cout), bn=bn(ks[7], cout)),
    )


# ---------------------------------------------------------------------------
# Pure-JAX reference (for verification)
# ---------------------------------------------------------------------------
def reference_forward(x_nchw, y_nchw, params):
    x = jnp.transpose(x_nchw, (0, 2, 3, 1)).astype(jnp.float32)
    y = jnp.transpose(y_nchw, (0, 2, 3, 1)).astype(jnp.float32)

    def conv_bn(inp, w_hwio, bn, dilation, padding):
        scale, bias = _fold_bn(bn)
        out = jax.lax.conv_general_dilated(
            inp, w_hwio, (1, 1),
            [(padding, padding), (padding, padding)],
            rhs_dilation=(dilation, dilation),
            dimension_numbers=("NHWC", "HWIO", "NHWC"),
            precision=jax.lax.Precision.HIGHEST)
        return out * scale.reshape(1, 1, 1, -1) + bias.reshape(1, 1, 1, -1)

    x1 = conv_bn(x, params["conv1"]["w"], params["conv1"]["bn"], 1, 0)
    r = jax.nn.sigmoid(
        conv_bn(y, params["residual"]["w"], params["residual"]["bn"], 1, 1)) * y
    x2 = conv_bn(x1 + r, params["conv2"]["w"], params["conv2"]["bn"], 8, 8)
    x3 = x1 + x2
    x4 = conv_bn(x3, params["conv3"]["w"], params["conv3"]["bn"], 1, 0)
    return jnp.transpose(x4, (0, 3, 1, 2))


# ---------------------------------------------------------------------------
if __name__ == "__main__":
    key = jax.random.PRNGKey(0)
    kx, ky, kp = jax.random.split(key, 3)

    N, C, H, W = 2, 8, 16, 16                 # in_channel == out_channel == 8
    x = jax.random.normal(kx, (N, C, H, W), jnp.float32)
    y = jax.random.normal(ky, (N, C, H, W), jnp.float32)
    params = init_params(kp, C, C)

    out = jax.block_until_ready(tdc3x3_8_forward(x, y, params))
    assert out.shape == (N, C, H, W) and out.dtype == jnp.float32

    ref = jax.block_until_ready(reference_forward(x, y, params))
    max_err = float(jnp.max(jnp.abs(out - ref)))
    # Kernel matmuls run at default MXU precision (bf16 multiply, f32
    # accumulate) across two 3x3 convs + two 1x1 convs; tolerance sized for it.
    if max_err > 5e-2:
        raise AssertionError(f"kernel/reference mismatch, max abs err = {max_err}")

    print("KERNEL_OK")
</pallas_src>

<mosaic_0001>
module attributes {stable_mosaic.version = 11 : i64} {
  func.func @kernel(%arg0: i32, %arg1: memref<1x8x256xf32, #tpu.memory_space<vmem>>, %arg2: memref<1x8x256xf32, #tpu.memory_space<vmem>>, %arg3: memref<18x256xf32, #tpu.memory_space<vmem>>, %arg4: memref<8x8xf32, #tpu.memory_space<vmem>>, %arg5: memref<8x1xf32, #tpu.memory_space<vmem>>, %arg6: memref<8x72xf32, #tpu.memory_space<vmem>>, %arg7: memref<8x1xf32, #tpu.memory_space<vmem>>, %arg8: memref<8x72xf32, #tpu.memory_space<vmem>>, %arg9: memref<8x1xf32, #tpu.memory_space<vmem>>, %arg10: memref<8x8xf32, #tpu.memory_space<vmem>>, %arg11: memref<8x1xf32, #tpu.memory_space<vmem>>, %arg12: memref<1x8x256xf32, #tpu.memory_space<vmem>>) attributes {dimension_semantics = [#tpu.dimension_semantics<parallel>], iteration_bounds = array<i64: 2>, scalar_prefetch = 0 : i64, scratch_operands = 0 : i64, tpu.core_type = #tpu.core_type<tc>, window_params = [{transform_indices = @transform_0, window_bounds = array<i64: 1, 8, 256>}, {transform_indices = @transform_1, window_bounds = array<i64: 1, 8, 256>}, {pipeline_mode = #tpu.pipeline_mode<synchronous>, transform_indices = @transform_2, window_bounds = array<i64: 18, 256>}, {pipeline_mode = #tpu.pipeline_mode<synchronous>, transform_indices = @transform_3, window_bounds = array<i64: 8, 8>}, {pipeline_mode = #tpu.pipeline_mode<synchronous>, transform_indices = @transform_4, window_bounds = array<i64: 8, 1>}, {pipeline_mode = #tpu.pipeline_mode<synchronous>, transform_indices = @transform_5, window_bounds = array<i64: 8, 72>}, {pipeline_mode = #tpu.pipeline_mode<synchronous>, transform_indices = @transform_6, window_bounds = array<i64: 8, 1>}, {pipeline_mode = #tpu.pipeline_mode<synchronous>, transform_indices = @transform_7, window_bounds = array<i64: 8, 72>}, {pipeline_mode = #tpu.pipeline_mode<synchronous>, transform_indices = @transform_8, window_bounds = array<i64: 8, 1>}, {pipeline_mode = #tpu.pipeline_mode<synchronous>, transform_indices = @transform_9, window_bounds = array<i64: 8, 8>}, {pipeline_mode = #tpu.pipeline_mode<synchronous>, transform_indices = @transform_10, window_bounds = array<i64: 8, 1>}, {transform_indices = @transform_11, window_bounds = array<i64: 1, 8, 256>}]} {
    %c0 = arith.constant 0 : index
    %c0_0 = arith.constant 0 : index
    %c0_1 = arith.constant 0 : index
    %0 = vector.load %arg1[%c0, %c0_0, %c0_1] : memref<1x8x256xf32, #tpu.memory_space<vmem>>, vector<1x8x256xf32>
    %1 = vector.shape_cast %0 : vector<1x8x256xf32> to vector<8x256xf32>
    %c0_2 = arith.constant 0 : index
    %c0_3 = arith.constant 0 : index
    %c0_4 = arith.constant 0 : index
    %2 = vector.load %arg2[%c0_2, %c0_3, %c0_4] : memref<1x8x256xf32, #tpu.memory_space<vmem>>, vector<1x8x256xf32>
    %3 = vector.shape_cast %2 : vector<1x8x256xf32> to vector<8x256xf32>
    %c0_5 = arith.constant 0 : index
    %c0_6 = arith.constant 0 : index
    %4 = vector.load %arg3[%c0_5, %c0_6] : memref<18x256xf32, #tpu.memory_space<vmem>>, vector<18x256xf32>
    %c0_7 = arith.constant 0 : index
    %c0_8 = arith.constant 0 : index
    %5 = vector.load %arg4[%c0_7, %c0_8] : memref<8x8xf32, #tpu.memory_space<vmem>>, vector<8x8xf32>
    %cst = arith.constant dense<0.000000e+00> : vector<8x256xf32>
    %6 = tpu.matmul %5, %1, %cst {dimension_numbers = #tpu.dot_dimension_numbers<[1], [0], [0], [1], [0, 0, 1, 1], [], []>} : vector<8x8xf32>, vector<8x256xf32>, vector<8x256xf32> -> vector<8x256xf32>
    %c0_9 = arith.constant 0 : index
    %c0_10 = arith.constant 0 : index
    %7 = vector.load %arg5[%c0_9, %c0_10] : memref<8x1xf32, #tpu.memory_space<vmem>>, vector<8x1xf32>
    %8 = vector.broadcast %7 : vector<8x1xf32> to vector<8x256xf32>
    %9 = arith.addf %6, %8 : vector<8x256xf32>
    %c0_11 = arith.constant 0 : index
    %c0_12 = arith.constant 0 : index
    %10 = vector.load %arg6[%c0_11, %c0_12] : memref<8x72xf32, #tpu.memory_space<vmem>>, vector<8x72xf32>
    %11 = vector.extract_strided_slice %4 {offsets = [0, 0], sizes = [9, 256], strides = [1, 1]} : vector<18x256xf32> to vector<9x256xf32>
    %c17_i32 = arith.constant 17 : i32
    %12 = tpu.dynamic_rotate %3 by %c17_i32 dim 1 : vector<8x256xf32>, i32 -> vector<8x256xf32>
    %13 = vector.extract_strided_slice %11 {offsets = [0, 0], sizes = [1, 256], strides = [1, 1]} : vector<9x256xf32> to vector<1x256xf32>
    %14 = vector.broadcast %13 : vector<1x256xf32> to vector<8x256xf32>
    %15 = arith.mulf %12, %14 : vector<8x256xf32>
    %c16_i32 = arith.constant 16 : i32
    %16 = tpu.dynamic_rotate %3 by %c16_i32 dim 1 : vector<8x256xf32>, i32 -> vector<8x256xf32>
    %17 = vector.extract_strided_slice %11 {offsets = [1, 0], sizes = [1, 256], strides = [1, 1]} : vector<9x256xf32> to vector<1x256xf32>
    %18 = vector.broadcast %17 : vector<1x256xf32> to vector<8x256xf32>
    %19 = arith.mulf %16, %18 : vector<8x256xf32>
    %c15_i32 = arith.constant 15 : i32
    %20 = tpu.dynamic_rotate %3 by %c15_i32 dim 1 : vector<8x256xf32>, i32 -> vector<8x256xf32>
    %21 = vector.extract_strided_slice %11 {offsets = [2, 0], sizes = [1, 256], strides = [1, 1]} : vector<9x256xf32> to vector<1x256xf32>
    %22 = vector.broadcast %21 : vector<1x256xf32> to vector<8x256xf32>
    %23 = arith.mulf %20, %22 : vector<8x256xf32>
    %c1_i32 = arith.constant 1 : i32
    %24 = tpu.dynamic_rotate %3 by %c1_i32 dim 1 : vector<8x256xf32>, i32 -> vector<8x256xf32>
    %25 = vector.extract_strided_slice %11 {offsets = [3, 0], sizes = [1, 256], strides = [1, 1]} : vector<9x256xf32> to vector<1x256xf32>
    %26 = vector.broadcast %25 : vector<1x256xf32> to vector<8x256xf32>
    %27 = arith.mulf %24, %26 : vector<8x256xf32>
    %c255_i32 = arith.constant 255 : i32
    %28 = tpu.dynamic_rotate %3 by %c255_i32 dim 1 : vector<8x256xf32>, i32 -> vector<8x256xf32>
    %29 = vector.extract_strided_slice %11 {offsets = [5, 0], sizes = [1, 256], strides = [1, 1]} : vector<9x256xf32> to vector<1x256xf32>
    %30 = vector.broadcast %29 : vector<1x256xf32> to vector<8x256xf32>
    %31 = arith.mulf %28, %30 : vector<8x256xf32>
    %c241_i32 = arith.constant 241 : i32
    %32 = tpu.dynamic_rotate %3 by %c241_i32 dim 1 : vector<8x256xf32>, i32 -> vector<8x256xf32>
    %33 = vector.extract_strided_slice %11 {offsets = [6, 0], sizes = [1, 256], strides = [1, 1]} : vector<9x256xf32> to vector<1x256xf32>
    %34 = vector.broadcast %33 : vector<1x256xf32> to vector<8x256xf32>
    %35 = arith.mulf %32, %34 : vector<8x256xf32>
    %c240_i32 = arith.constant 240 : i32
    %36 = tpu.dynamic_rotate %3 by %c240_i32 dim 1 : vector<8x256xf32>, i32 -> vector<8x256xf32>
    %37 = vector.extract_strided_slice %11 {offsets = [7, 0], sizes = [1, 256], strides = [1, 1]} : vector<9x256xf32> to vector<1x256xf32>
    %38 = vector.broadcast %37 : vector<1x256xf32> to vector<8x256xf32>
    %39 = arith.mulf %36, %38 : vector<8x256xf32>
    %c239_i32 = arith.constant 239 : i32
    %40 = tpu.dynamic_rotate %3 by %c239_i32 dim 1 : vector<8x256xf32>, i32 -> vector<8x256xf32>
    %41 = vector.extract_strided_slice %11 {offsets = [8, 0], sizes = [1, 256], strides = [1, 1]} : vector<9x256xf32> to vector<1x256xf32>
    %42 = vector.broadcast %41 : vector<1x256xf32> to vector<8x256xf32>
    %43 = arith.mulf %40, %42 : vector<8x256xf32>
    %44 = tpu.concatenate %15, %19, %23, %27, %3, %31, %35, %39, %43 in 0 : vector<8x256xf32>, vector<8x256xf32>, vector<8x256xf32>, vector<8x256xf32>, vector<8x256xf32>, vector<8x256xf32>, vector<8x256xf32>, vector<8x256xf32>, vector<8x256xf32> -> vector<72x256xf32>
    %cst_13 = arith.constant dense<0.000000e+00> : vector<8x256xf32>
    %45 = tpu.matmul %10, %44, %cst_13 {dimension_numbers = #tpu.dot_dimension_numbers<[1], [0], [0], [1], [0, 0, 1, 1], [], []>} : vector<8x72xf32>, vector<72x256xf32>, vector<8x256xf32> -> vector<8x256xf32>
    %c0_14 = arith.constant 0 : index
    %c0_15 = arith.constant 0 : index
    %46 = vector.load %arg7[%c0_14, %c0_15] : memref<8x1xf32, #tpu.memory_space<vmem>>, vector<8x1xf32>
    %47 = vector.broadcast %46 : vector<8x1xf32> to vector<8x256xf32>
    %48 = arith.addf %45, %47 : vector<8x256xf32>
    %49 = arith.negf %48 : vector<8x256xf32>
    %50 = math.exp %49 : vector<8x256xf32>
    %cst_16 = arith.constant 1.000000e+00 : f32
    %51 = vector.broadcast %cst_16 : f32 to vector<8x256xf32>
    %52 = arith.addf %51, %50 : vector<8x256xf32>
    %53 = arith.divf %51, %52 : vector<8x256xf32>
    %54 = arith.mulf %53, %3 : vector<8x256xf32>
    %55 = arith.addf %9, %54 : vector<8x256xf32>
    %c0_17 = arith.constant 0 : index
    %c0_18 = arith.constant 0 : index
    %56 = vector.load %arg8[%c0_17, %c0_18] : memref<8x72xf32, #tpu.memory_space<vmem>>, vector<8x72xf32>
    %57 = vector.extract_strided_slice %4 {offsets = [9, 0], sizes = [9, 256], strides = [1, 1]} : vector<18x256xf32> to vector<9x256xf32>
    %c136_i32 = arith.constant 136 : i32
    %58 = tpu.dynamic_rotate %55 by %c136_i32 dim 1 : vector<8x256xf32>, i32 -> vector<8x256xf32>
    %59 = vector.extract_strided_slice %57 {offsets = [0, 0], sizes = [1, 256], strides = [1, 1]} : vector<9x256xf32> to vector<1x256xf32>
    %60 = vector.broadcast %59 : vector<1x256xf32> to vector<8x256xf32>
    %61 = arith.mulf %58, %60 : vector<8x256xf32>
    %c128_i32 = arith.constant 128 : i32
    %62 = tpu.dynamic_rotate %55 by %c128_i32 dim 1 : vector<8x256xf32>, i32 -> vector<8x256xf32>
    %63 = vector.extract_strided_slice %57 {offsets = [1, 0], sizes = [1, 256], strides = [1, 1]} : vector<9x256xf32> to vector<1x256xf32>
    %64 = vector.broadcast %63 : vector<1x256xf32> to vector<8x256xf32>
    %65 = arith.mulf %62, %64 : vector<8x256xf32>
    %c120_i32 = arith.constant 120 : i32
    %66 = tpu.dynamic_rotate %55 by %c120_i32 dim 1 : vector<8x256xf32>, i32 -> vector<8x256xf32>
    %67 = vector.extract_strided_slice %57 {offsets = [2, 0], sizes = [1, 256], strides = [1, 1]} : vector<9x256xf32> to vector<1x256xf32>
    %68 = vector.broadcast %67 : vector<1x256xf32> to vector<8x256xf32>
    %69 = arith.mulf %66, %68 : vector<8x256xf32>
    %c8_i32 = arith.constant 8 : i32
    %70 = tpu.dynamic_rotate %55 by %c8_i32 dim 1 : vector<8x256xf32>, i32 -> vector<8x256xf32>
    %71 = vector.extract_strided_slice %57 {offsets = [3, 0], sizes = [1, 256], strides = [1, 1]} : vector<9x256xf32> to vector<1x256xf32>
    %72 = vector.broadcast %71 : vector<1x256xf32> to vector<8x256xf32>
    %73 = arith.mulf %70, %72 : vector<8x256xf32>
    %c248_i32 = arith.constant 248 : i32
    %74 = tpu.dynamic_rotate %55 by %c248_i32 dim 1 : vector<8x256xf32>, i32 -> vector<8x256xf32>
    %75 = vector.extract_strided_slice %57 {offsets = [5, 0], sizes = [1, 256], strides = [1, 1]} : vector<9x256xf32> to vector<1x256xf32>
    %76 = vector.broadcast %75 : vector<1x256xf32> to vector<8x256xf32>
    %77 = arith.mulf %74, %76 : vector<8x256xf32>
    %c136_i32_19 = arith.constant 136 : i32
    %78 = tpu.dynamic_rotate %55 by %c136_i32_19 dim 1 : vector<8x256xf32>, i32 -> vector<8x256xf32>
    %79 = vector.extract_strided_slice %57 {offsets = [6, 0], sizes = [1, 256], strides = [1, 1]} : vector<9x256xf32> to vector<1x256xf32>
    %80 = vector.broadcast %79 : vector<1x256xf32> to vector<8x256xf32>
    %81 = arith.mulf %78, %80 : vector<8x256xf32>
    %c128_i32_20 = arith.constant 128 : i32
    %82 = tpu.dynamic_rotate %55 by %c128_i32_20 dim 1 : vector<8x256xf32>, i32 -> vector<8x256xf32>
    %83 = vector.extract_strided_slice %57 {offsets = [7, 0], sizes = [1, 256], strides = [1, 1]} : vector<9x256xf32> to vector<1x256xf32>
    %84 = vector.broadcast %83 : vector<1x256xf32> to vector<8x256xf32>
    %85 = arith.mulf %82, %84 : vector<8x256xf32>
    %c120_i32_21 = arith.constant 120 : i32
    %86 = tpu.dynamic_rotate %55 by %c120_i32_21 dim 1 : vector<8x256xf32>, i32 -> vector<8x256xf32>
    %87 = vector.extract_strided_slice %57 {offsets = [8, 0], sizes = [1, 256], strides = [1, 1]} : vector<9x256xf32> to vector<1x256xf32>
    %88 = vector.broadcast %87 : vector<1x256xf32> to vector<8x256xf32>
    %89 = arith.mulf %86, %88 : vector<8x256xf32>
    %90 = tpu.concatenate %61, %65, %69, %73, %55, %77, %81, %85, %89 in 0 : vector<8x256xf32>, vector<8x256xf32>, vector<8x256xf32>, vector<8x256xf32>, vector<8x256xf32>, vector<8x256xf32>, vector<8x256xf32>, vector<8x256xf32>, vector<8x256xf32> -> vector<72x256xf32>
    %cst_22 = arith.constant dense<0.000000e+00> : vector<8x256xf32>
    %91 = tpu.matmul %56, %90, %cst_22 {dimension_numbers = #tpu.dot_dimension_numbers<[1], [0], [0], [1], [0, 0, 1, 1], [], []>} : vector<8x72xf32>, vector<72x256xf32>, vector<8x256xf32> -> vector<8x256xf32>
    %c0_23 = arith.constant 0 : index
    %c0_24 = arith.constant 0 : index
    %92 = vector.load %arg9[%c0_23, %c0_24] : memref<8x1xf32, #tpu.memory_space<vmem>>, vector<8x1xf32>
    %93 = vector.broadcast %92 : vector<8x1xf32> to vector<8x256xf32>
    %94 = arith.addf %91, %93 : vector<8x256xf32>
    %95 = arith.addf %9, %94 : vector<8x256xf32>
    %c0_25 = arith.constant 0 : index
    %c0_26 = arith.constant 0 : index
    %96 = vector.load %arg10[%c0_25, %c0_26] : memref<8x8xf32, #tpu.memory_space<vmem>>, vector<8x8xf32>
    %cst_27 = arith.constant dense<0.000000e+00> : vector<8x256xf32>
    %97 = tpu.matmul %96, %95, %cst_27 {dimension_numbers = #tpu.dot_dimension_numbers<[1], [0], [0], [1], [0, 0, 1, 1], [], []>} : vector<8x8xf32>, vector<8x256xf32>, vector<8x256xf32> -> vector<8x256xf32>
    %c0_28 = arith.constant 0 : index
    %c0_29 = arith.constant 0 : index
    %98 = vector.load %arg11[%c0_28, %c0_29] : memref<8x1xf32, #tpu.memory_space<vmem>>, vector<8x1xf32>
    %99 = vector.broadcast %98 : vector<8x1xf32> to vector<8x256xf32>
    %100 = arith.addf %97, %99 : vector<8x256xf32>
    %c0_30 = arith.constant 0 : index
    %c0_31 = arith.constant 0 : index
    %c0_32 = arith.constant 0 : index
    %101 = vector.load %arg12[%c0_30, %c0_31, %c0_32] : memref<1x8x256xf32, #tpu.memory_space<vmem>>, vector<1x8x256xf32>
    %102 = vector.shape_cast %101 : vector<1x8x256xf32> to vector<8x256xf32>
    %103 = vector.shape_cast %100 : vector<8x256xf32> to vector<1x8x256xf32>
    tpu.vector_store %arg12[%c0_30, %c0_31, %c0_32], %103 {strides = array<i32>} : memref<1x8x256xf32, #tpu.memory_space<vmem>>, vector<1x8x256xf32>,
    return
  }
  func.func @transform_0(%arg0: i32) -> (i32, i32, i32) {
    %c0_i32 = arith.constant 0 : i32
    %c0_i32_0 = arith.constant 0 : i32
    %c0_i32_1 = arith.constant 0 : i32
    return %arg0, %c0_i32, %c0_i32_0 : i32, i32, i32
  }
  func.func @transform_1(%arg0: i32) -> (i32, i32, i32) {
    %c0_i32 = arith.constant 0 : i32
    %c0_i32_0 = arith.constant 0 : i32
    %c0_i32_1 = arith.constant 0 : i32
    return %arg0, %c0_i32, %c0_i32_0 : i32, i32, i32
  }
  func.func @transform_2(%arg0: i32) -> (i32, i32) {
    %c0_i32 = arith.constant 0 : i32
    %c0_i32_0 = arith.constant 0 : i32
    %c0_i32_1 = arith.constant 0 : i32
    return %c0_i32, %c0_i32_0 : i32, i32
  }
  func.func @transform_3(%arg0: i32) -> (i32, i32) {
    %c0_i32 = arith.constant 0 : i32
    %c0_i32_0 = arith.constant 0 : i32
    %c0_i32_1 = arith.constant 0 : i32
    return %c0_i32, %c0_i32_0 : i32, i32
  }
  func.func @transform_4(%arg0: i32) -> (i32, i32) {
    %c0_i32 = arith.constant 0 : i32
    %c0_i32_0 = arith.constant 0 : i32
    %c0_i32_1 = arith.constant 0 : i32
    return %c0_i32, %c0_i32_0 : i32, i32
  }
  func.func @transform_5(%arg0: i32) -> (i32, i32) {
    %c0_i32 = arith.constant 0 : i32
    %c0_i32_0 = arith.constant 0 : i32
    %c0_i32_1 = arith.constant 0 : i32
    return %c0_i32, %c0_i32_0 : i32, i32
  }
  func.func @transform_6(%arg0: i32) -> (i32, i32) {
    %c0_i32 = arith.constant 0 : i32
    %c0_i32_0 = arith.constant 0 : i32
    %c0_i32_1 = arith.constant 0 : i32
    return %c0_i32, %c0_i32_0 : i32, i32
  }
  func.func @transform_7(%arg0: i32) -> (i32, i32) {
    %c0_i32 = arith.constant 0 : i32
    %c0_i32_0 = arith.constant 0 : i32
    %c0_i32_1 = arith.constant 0 : i32
    return %c0_i32, %c0_i32_0 : i32, i32
  }
  func.func @transform_8(%arg0: i32) -> (i32, i32) {
    %c0_i32 = arith.constant 0 : i32
    %c0_i32_0 = arith.constant 0 : i32
    %c0_i32_1 = arith.constant 0 : i32
    return %c0_i32, %c0_i32_0 : i32, i32
  }
  func.func @transform_9(%arg0: i32) -> (i32, i32) {
    %c0_i32 = arith.constant 0 : i32
    %c0_i32_0 = arith.constant 0 : i32
    %c0_i32_1 = arith.constant 0 : i32
    return %c0_i32, %c0_i32_0 : i32, i32
  }
  func.func @transform_10(%arg0: i32) -> (i32, i32) {
    %c0_i32 = arith.constant 0 : i32
    %c0_i32_0 = arith.constant 0 : i32
    %c0_i32_1 = arith.constant 0 : i32
    return %c0_i32, %c0_i32_0 : i32, i32
  }
  func.func @transform_11(%arg0: i32) -> (i32, i32, i32) {
    %c0_i32 = arith.constant 0 : i32
    %c0_i32_0 = arith.constant 0 : i32
    %c0_i32_1 = arith.constant 0 : i32
    return %arg0, %c0_i32, %c0_i32_0 : i32, i32, i32
  }
}

</mosaic_0001>

<bundles_post_ra>
// kernel: tpu_custom_call.1
= control target key start
LH: loop header
LB: loop body
LE: loop exit
PB: predicated region body
PF: predicated region fallthrough
CT: control target
= control target key end

     0   :  { %s1637_s0 = inlined_call_operand.hbm [shape: f32[2,8,256], index: 0, kind: input, shape index: {}]   ;;  %s1638_s1 = inlined_call_operand.hbm [shape: f32[2,8,256], index: 1, kind: input, shape index: {}]   ;;  %s1639_s2 = inlined_call_operand.hbm [shape: f32[18,256], index: 2, kind: input, shape index: {}]   ;;  %s1640_s3 = inlined_call_operand.vmem [shape: f32[8,8], index: 3, kind: input, shape index: {}]   ;;  %s1641_s4 = inlined_call_operand.vmem [shape: f32[8,1], index: 4, kind: input, shape index: {}]   ;;  %s1642_s5 = inlined_call_operand.vmem [shape: f32[8,72], index: 5, kind: input, shape index: {}]   ;;  %s1643_s6 = inlined_call_operand.vmem [shape: f32[8,1], index: 6, kind: input, shape index: {}]   ;;  %s1644_s7 = inlined_call_operand.vmem [shape: f32[8,72], index: 7, kind: input, shape index: {}]   ;;  %s1645_s8 = inlined_call_operand.vmem [shape: f32[8,1], index: 8, kind: input, shape index: {}]   ;;  %s1646_s9 = inlined_call_operand.vmem [shape: f32[8,8], index: 9, kind: input, shape index: {}]   ;;  %s1647_s10 = inlined_call_operand.vmem [shape: f32[8,1], index: 10, kind: input, shape index: {}]   ;;  %s1648_s11 = inlined_call_operand.hbm [shape: f32[2,8,256], index: 11, kind: output, shape index: {}]  }
   0x1   :  { %1658 = sst [smem:[#allocation20_spill]] %s1639_s2 }
   0x2   :  { %1659 = sst [smem:[#allocation21_spill]] %s1646_s9 }
   0x3   :  { %1660 = sst [smem:[#allocation22_spill]] %s1648_s11 }
   0x4   :  { %16 = vsyncpa [#allocation3], 0 }
   0x5   :  { %18 = vsyncpa [#allocation3 + $0x1], 0 }
   0x6   :  { %19 = vsyncpa [#allocation6], 0 }
   0x7   :  { %21 = vsyncpa [#allocation6 + $0x1], 0 }
   0x8   :  { %22 = vsyncpa [#allocation4], 0 }
   0x9   :  { %24 = vsyncpa [#allocation4 + $0x1], 0  ;;  %s1333_s17 = smov 0   ;;  %s1335_s18 = smov 0  }
   0xa   :  { %s1337_s19 = smov 0   ;;  %s1339_s20 = smov 0  }
   0xb LB: > { %1661 = sst [smem:[#allocation13_spill]] %s1245_s17  ;;  %s1357_s24 = sadd.s32 4294967295, %s1257_s20   ;;  %s1257_s20 = sphi %s1339_s20, %s1682_s20   ;;  %s1253_s19 = sphi %s1337_s19, %s1684_s19   ;;  %s1249_s18 = sphi %s1335_s18, %s1686_s18   ;;  %s1245_s17 = sphi %s1333_s17, %s1685_s17  }
   0xc   : > { %1662 = sst [smem:[#allocation14_spill]] %s1253_s19  ;;  %p975_p0 = scmp.ge.s32.totalorder %s1257_s20, 1 }
   0xd   : > { %1663 = sst [smem:[#allocation15_spill]] %s1257_s20  ;;  %p51_p1 = scmp.eq.s32.totalorder %s1357_s24, 0 }
   0xe   : > { %s1664_s2 = sld [smem:[#allocation20_spill]]  ;;  %p302_p2 = scmp.lt.s32.totalorder %s1257_s20, 3 }
   0xf   : > { %s1259_s26 = smov [#allocation7]   ;;  %s1260_s28 = smov 256  }
  0x10   : > { %p1362_p3 = pnand %p975_p0, %p302_p2  ;;  %s315_s27 = sshll.u32 %s1259_s26, 4  ;;  %s316_s27 = int_to_ptr.vmem [resolvable:$true] %s315_s27 }
  0x11   : > { %s1261_s29 = smov 16   ;;  %s974_s30 = sadd.s32 4294967294, %s1257_s20  }
  0x12   : > { %p1017_p4 = pneg %p1362_p3  ;;  %s1373_s12 = sadd.s32 1, %s1257_s20  }
  0x13   : > { %1666 = sst [smem:[#allocation16_spill]] %s1373_s12  ;;  %s37_s13 = sadd.s32 1, %s1253_s19 }
  0x14   : > { %s313_s23 = sshll.u32 %s1664_s2, 4  ;;  %p1018_p6 = pnand %p1017_p4, %p51_p1  ;;  %s314_s23 = int_to_ptr.hbm [resolvable:$true] %s313_s23 }
  0x15   : > { %s34_s14 = ssub.s32 %s1257_s20, %s1373_s12  ;;  %p44_p7 = scmp.ne.s32.totalorder %s1253_s19, %s1249_s18 }
  0x16   : > { %1020 = dma.hbm_to_vmem [thread:$0]  (!%p1018_p6), %s314_s23, 768, %s316_s27, [#allocation6], %s1260_s28, %s1260_s28, %s1261_s29  }
  0x17   : > { %p35_p8 = scmp.eq.s32.totalorder %s34_s14, 0  ;;  %p45_p9 = scmp.eq.s32.totalorder %s1257_s20, 0 }
  0x18   : > { %p50_p10 = scmp.ne.s32.totalorder %s1249_s18, %s1245_s17  ;;  %p289_p11 = scmp.eq.s32.totalorder %s1357_s24, 1 }
  0x19   : > { %s1385_s15 = scalar_select %p35_p8, %s1253_s19, %s37_s13  }
  0x1a   : > { %p1387_p12 = por %p45_p9, %p44_p7  ;;  %p1393_p13 = por %p51_p1, %p50_p10 }
  0x1b   : > { %1667 = sst [smem:[#allocation17_spill]] %s1385_s15  ;;  %p1397_p0 = por %p289_p11, %p44_p7 }
  0x1c   : > { %p295_p2 = scmp.eq.s32.totalorder %s974_s30, 1  ;;  %p1033_p4 = scmp.lt.s32.totalorder %s1257_s20, 2 }
  0x1d   : > { %s1670_s22 = scalar_select %p1397_p0, 1, 0 }
  0x1e   : > { %s353_s23 = sand.u32 1, %s1253_s19   ;;  %p1403_p6 = por %p295_p2, %p50_p10 }
  0x1f   : > { %1671 = sst [smem:[#allocation18_spill]] %s1670_s22  ;;  %s978_s27 = sshll.u32 %s353_s23, 4 }
  0x20   : > { %s1672_s26 = scalar_select %p1403_p6, 1, 0 }
  0x21   : > { %s1004_s28 = sshll.u32 %s1257_s20, 4  ;;  %s357_s15 = scalar_lea.vmem [#allocation2], %s978_s27 }
  0x22   : > { %1673 = sst [smem:[#allocation19_spill]] %s1672_s26  ;;  %s362_s14 = scalar_lea.hbm %s1637_s0, %s1004_s28 }
  0x23   : > { %s364_s2 = sshll.u32 %s362_s14, 4  ;;  %s366_s12 = sshll.u32 %s357_s15, 4  ;;  %s365_s2 = int_to_ptr.hbm [resolvable:$true] %s364_s2  ;;  %s367_s12 = int_to_ptr.vmem [resolvable:$true] %s366_s12 }
  0x24   : > { %p1413_p7 = pnand %p1033_p4, %p1387_p12  ;;  %s382_s26 = scalar_lea.hbm %s1638_s1, %s1004_s28 }
  0x25   : > { %s373_s22 = sand.u32 1, %s1257_s20   ;;  %s354_s11 = scalar_lea.sflag [#allocation3], %s353_s23 }
  0x26   : > { %s1123_s29 = sshra.s32 %s365_s2, 4  ;;  %p1127_p9 = pneg %p1413_p7  ;;  %s1124_s29 = int_to_ptr.hbm [resolvable:$true] %s1123_s29 }
  0x27   : > { %s1125_s13 = scalar_lea.hbm %s1124_s29, 16  ;;  %s1130_s14 = scalar_lea.hbm %s1637_s0, 32 }
  0x28   : > { %p1126_p8 = scmp.ne.s32.totalorder %s1124_s29, %s1125_s13  ;;  %p1131_p12 = scmp.lt.s32.totalorder %s1124_s29, %s1637_s0 }
  0x29   : > { %p1132_p2 = scmp.lt.s32.totalorder %s1130_s14, %s1125_s13 }
  0x2a   : > { %p1128_p10 = pnand %p1127_p9, %p1126_p8 }
  0x2b   : > { %p1133_p4 = por %p1132_p2, %p1131_p12 }
  0x2c   : > { %p1129_p11 = pneg %p1128_p10 }
  0x2e   : > { %p1134_p5 = pnand %p1133_p4, %p1129_p11 }
  0x30   : > { %1137 = shalt.err (!%p1134_p5)
}
  0x31   : > { %1024 = dma.hbm_to_vmem [thread:$0]  (!%p1413_p7), %s365_s2, 256, %s367_s12, %s354_s11  }
  0x32   : > { %s384_s23 = sshll.u32 %s382_s26, 4  ;;  %s377_s28 = scalar_lea.vmem [#allocation5], %s978_s27  ;;  %s385_s23 = int_to_ptr.hbm [resolvable:$true] %s384_s23 }
  0x33   : > { %s386_s20 = sshll.u32 %s377_s28, 4  ;;  %s374_s9 = scalar_lea.sflag [#allocation6], %s373_s22  ;;  %s387_s20 = int_to_ptr.vmem [resolvable:$true] %s386_s20 }
  0x34   : > { %s1153_s15 = sshra.s32 %s385_s23, 4  ;;  %s1160_s14 = scalar_lea.hbm %s1638_s1, 32  ;;  %s1154_s15 = int_to_ptr.hbm [resolvable:$true] %s1153_s15 }
  0x35   : > { %s1155_s16 = scalar_lea.hbm %s1154_s15, 16  ;;  %p1161_p5 = scmp.lt.s32.totalorder %s1154_s15, %s1638_s1 }
  0x36   : > { %p1156_p8 = scmp.ne.s32.totalorder %s1154_s15, %s1155_s16  ;;  %p1162_p11 = scmp.lt.s32.totalorder %s1160_s14, %s1155_s16 }
  0x38   : > { %p1158_p10 = pnand %p1156_p8, %p1127_p9  ;;  %p1163_p2 = por %p1162_p11, %p1161_p5 }
  0x3a   : > { %p1159_p12 = pneg %p1158_p10 }
  0x3c   : > { %p1164_p4 = pnand %p1163_p2, %p1159_p12 }
  0x3e   : > { %1167 = shalt.err (!%p1164_p4)
}
  0x3f   : > { %1027 = dma.hbm_to_vmem [thread:$0]  (!%p1413_p7), %s385_s23, 256, %s387_s20, %s374_s9  }
  0x40   : > { %395 = sbr.rel (%p1362_p3) target bundleno = 809 (0x329), region = 64  ;;  %s1448_s11 = sand.u32 (!%p1362_p3), 1, %s1249_s18  }
  0x41   : > { %s1451_s12 = sshll.u32 (!%p1362_p3), %s1448_s11, 4  ;;  %s398_s22 = scalar_lea.sflag (!%p1362_p3), [#allocation3], %s1448_s11 }
  0x42   : > { %s401_s26 = scalar_lea.vmem (!%p1362_p3), [#allocation2], %s1451_s12 }
  0x45   : > { %1228 = dma.done.wait (%p1393_p13), %s398_s22, 256  }
  0x46   : > { %1230 = vsyncadd (%p1393_p13), %s398_s22, 4294967040  ;;  %s407_s9 = sand.u32 1, %s1357_s24   ;;  %s411_s25 = scalar_lea.vmem [#allocation5], %s1451_s12 }
  0x47   : > { %s408_s20 = scalar_lea.sflag [#allocation6], %s407_s9 }
  0x48   : > { %1232 = dma.done.wait (%p1393_p13), %s408_s20, 256  }
  0x49   : > { %1234 = vsyncadd (%p1393_p13), %s408_s20, 4294967040 }
  0x4a   : > { %1236 = dma.done.wait (%p51_p1), [#allocation6], 768  }
  0x4b   : > { %1238 = vsyncadd (%p51_p1), [#allocation6], 4294966528  ;;  %v1469_v0 = vld [vmem:[%s411_s25] sm:$0xff]  ;;  %s1262_s27 = smov 112   ;;  %s1263_s30 = smov 111   ;;  %v1474_v1 = vld [vmem:[%s411_s25 + $0x8] sm:$0xff]  ;;  %v527_v3 = vlaneseq }
  0x4c   : > { %591 = vrot.lane.b32.xlu1 %v1469_v0, %s1262_s27  ;;  %602 = vrot.lane.b32.xlu0 %v1469_v0, %s1263_s30  ;;  %s1264_s19 = smov 113   ;;  %s1265_s21 = smov 127   ;;  %v1491_v7 = vld [vmem:[#allocation7 + $0x10] sm:$0xff]  ;;  %v1493_v8 = vld [vmem:[#allocation7 + $0x18] sm:$0xff]  ;;  %v1495_v10 = vld [vmem:[#allocation7] sm:$0xff]  ;;  %v1270_v38 = vmov 0  }
  0x4d   : > { %580 = vrot.lane.b32.xlu2 %v1469_v0, %s1264_s19  ;;  %s1266_s23 = smov 1   ;;  %s1267_s28 = smov 15   ;;  %v1489_v6 = vand.u32 127, %v527_v3  ;;  %v1497_v11 = vld [vmem:[#allocation7 + $0x8] sm:$0xff]  ;;  %v609_v12 = vperm.slane %v1491_v7, 0  ;;  %v610_v13 = vperm.slane %v1493_v8, 0  ;;  %1082 = vset.pattern.permute.xlu1 %v1270_v38 }
  0x4e   : > { %s1268_s15 = smov 16   ;;  %s1269_s16 = smov 17   ;;  %v598_v16 = vperm.slane %v1495_v10, 7  ;;  %v599_v17 = vperm.slane %v1497_v11, 7  ;;  %v587_v24 = vperm.slane %v1495_v10, 6  ;;  %v588_v25 = vperm.slane %v1497_v11, 6  ;;  %1083 = vset.pattern.permute.xlu2 %v1270_v38  ;;  %1084 = vset.pattern.permute.xlu0 %v1270_v38 }
  0x4f   : > { %vm595_vm0 = vcmp.lt.s32.totalorder %v1489_v6, 112  ;;  %vm606_vm1 = vcmp.lt.s32.totalorder %v1489_v6, 111  ;;  %vm584_vm2 = vcmp.lt.s32.totalorder %v1489_v6, 113  ;;  %vm573_vm3 = vcmp.lt.s32.totalorder %v1489_v6, 127  ;;  %v461_v31 = vld [vmem:[%s401_s26] sm:$0xff]  ;;  %v462_v37 = vld [vmem:[%s401_s26 + $0x8] sm:$0xff] }
  0x50   : > { %v576_v34 = vperm.slane %v1495_v10, 5  ;;  %v577_v35 = vperm.slane %v1497_v11, 5  ;;  %v613_v36 = vld [vmem:[%s1643_s6] sm:$0xff]  ;;  %497 = vmatpush.msra.mxu0 %v461_v31  ;;  %vm478_vm4 = vcmask 64512   ;;  %517 = vmatpush.msra.mxu1 %v462_v37  ;;  %vm562_vm5 = vcmp.lt.s32.totalorder %v1489_v6, 1  ;;  %s1271_s20 = smov 8  }
  0x51   : > { %v471_v39 = vld [vmem:[%s1640_s3] sm:$0xff]  ;;  %v565_v47 = vperm.slane %v1495_v10, 3  ;;  %v566_v48 = vperm.slane %v1497_v11, 3  ;;  %vm551_vm6 = vcmp.lt.s32.totalorder %v1489_v6, 15  ;;  %v554_v50 = vperm.slane %v1495_v10, 2  ;;  %s1272_s25 = smov 120  }
  0x52   : > { %989 = vmatmul.msk.f32.vlgmr.msra.gmra.mxu0 %vm478_vm4, %v471_v39  ;;  %990 = vmatmul.msk.f32.vlgmr.msra.gmra.mxu1 %vm478_vm4, %v471_v39  ;;  %v472_v46 = vld [vmem:[%s1641_s4] sm:$0xff]  ;;  %v555_v51 = vperm.slane %v1497_v11, 2  ;;  %vm540_vm7 = vcmp.lt.s32.totalorder %v1489_v6, 16  ;;  %v543_v62 = vperm.slane %v1495_v10, 1  ;;  %v544_v63 = vperm.slane %v1497_v11, 1  ;;  %s1675_s29 = sld [smem:[#allocation21_spill]] }
  0x53   : > { %vm529_vm8 = vcmp.lt.s32.totalorder %v1489_v6, 17  ;;  %vm619_vm9 = vcmask 588800   ;;  %s1006_s13 = sshll.u32 %s1357_s24, 4  ;;  %s1676_s2 = sld [smem:[#allocation22_spill]] }
  0x54   : > { %593 = vrot.lane.b32.xlu1 %v1474_v1, %s1262_s27  ;;  %604 = vrot.lane.b32.xlu0 %v1474_v1, %s1263_s30  ;;  %s460_s26 = scalar_lea.vmem [#allocation8], %s1451_s12  ;;  %s856_s27 = scalar_lea.sflag [#allocation4], %s1448_s11 }
  0x55   : > { %582 = vrot.lane.b32.xlu2 %v1474_v1, %s1264_s19 }
  0x59   : > { %s867_s22 = scalar_lea.hbm %s1676_s2, %s1006_s13 }
  0x5c   : > { %571 = vrot.lane.b32.xlu1 %v1474_v1, %s1265_s21  ;;  %569 = vrot.lane.b32.xlu0 %v1469_v0, %s1265_s21  ;;  %s1203_s21 = scalar_lea.hbm %s1676_s2, 32 }
  0x5d   : > { %558 = vrot.lane.b32.xlu2 %v1469_v0, %s1266_s23 }
  0x64   : > { %547 = vrot.lane.b32.xlu1 %v1469_v0, %s1267_s28  ;;  %560 = vrot.lane.b32.xlu0 %v1474_v1, %s1266_s23 }
  0x65   : > { %549 = vrot.lane.b32.xlu2 %v1474_v1, %s1267_s28 }
  0x6c   : > { %538 = vrot.lane.b32.xlu1 %v1474_v1, %s1268_s15  ;;  %536 = vrot.lane.b32.xlu0 %v1469_v0, %s1268_s15 }
  0x6d   : > { %523 = vrot.lane.b32.xlu2 %v1469_v0, %s1269_s16 }
  0x74   : > { %525 = vrot.lane.b32.xlu0 %v1474_v1, %s1269_s16  ;;  %616 = vperm.xlu1 %1082, %v613_v36  }
  0x75   : > { %475 = vperm.xlu2 %1083, %v472_v46  }
  0xa7   : > { %v581_v2 = vpop.permute.xlu2 %580 }
  0xaf   : > { %v583_v9 = vpop.permute.xlu2 %582 }
  0xb0   : > { %v585_v26 = vsel %vm584_vm2, %v581_v2, %v583_v9  ;;  %v586_v27 = vsel %vm584_vm2, %v583_v9, %v581_v2  ;;  %vm725_vm2 = vcmp.lt.s32.totalorder %v1489_v6, 120 }
  0xb1   : > { %v589_v32 = vmul.f32 %v587_v24, %v585_v26  ;;  %v590_v33 = vmul.f32 %v588_v25, %v586_v27 }
  0xb7   : > { %v559_v30 = vpop.permute.xlu2 %558 }
  0xbe   : > { %v592_v4 = vpop.permute.xlu1 %591  ;;  %v603_v5 = vpop.permute.xlu0 %602 }
  0xbf   : > { %v550_v49 = vpop.permute.xlu2 %549 }
  0xc6   : > { %v594_v14 = vpop.permute.xlu1 %593  ;;  %v605_v15 = vpop.permute.xlu0 %604 }
  0xc7   : > { %v596_v18 = vsel %vm595_vm0, %v592_v4, %v594_v14  ;;  %v597_v19 = vsel %vm595_vm0, %v594_v14, %v592_v4  ;;  %v607_v20 = vsel %vm606_vm1, %v603_v5, %v605_v15  ;;  %v608_v21 = vsel %vm606_vm1, %v605_v15, %v603_v5 }
  0xc8   : > { %v611_v22 = vmul.f32 %v609_v12, %v607_v20  ;;  %v612_v23 = vmul.f32 %v610_v13, %v608_v21  ;;  %v600_v28 = vmul.f32 %v598_v16, %v596_v18  ;;  %v601_v29 = vmul.f32 %v599_v17, %v597_v19  ;;  %v524_v13 = vpop.permute.xlu2 %523  ;;  %v522_v21 = vld [vmem:[%s1642_s5] sm:$0xff] }
  0xc9   : > { %v532_v14 = vperm.slane %v1495_v10, 0  ;;  %v533_v15 = vperm.slane %v1497_v11, 0 }
  0xca   : > { %630 = vmatpush.msra.mxu2 %v611_v22  ;;  %650 = vmatpush.msra.mxu3 %v612_v23 }
  0xcc   : > { %631 = vmatpush.msra.mxu2 %v600_v28  ;;  %651 = vmatpush.msra.mxu3 %v601_v29 }
  0xce   : > { %v572_v40 = vpop.permute.xlu1 %571  ;;  %632 = vmatpush.msra.mxu2 %v589_v32  ;;  %652 = vmatpush.msra.mxu3 %v590_v33  ;;  %v570_v41 = vpop.permute.xlu0 %569 }
  0xcf   : > { %v574_v42 = vsel %vm573_vm3, %v570_v41, %v572_v40  ;;  %v575_v43 = vsel %vm573_vm3, %v572_v40, %v570_v41  ;;  %v519_v46 = vpop.f32.mrf.mxu1  ;;  %vm710_vm3 = vcmp.lt.s32.totalorder %v1489_v6, 8 }
  0xd0   : > { %v578_v44 = vmul.f32 %v576_v34, %v574_v42  ;;  %v579_v45 = vmul.f32 %v577_v35, %v575_v43  ;;  %v476_v41 = vpop.permute.xlu2 %475  ;;  %v499_v42 = vpop.f32.mrf.mxu0 }
  0xd2   : > { %633 = vmatpush.msra.mxu2 %v578_v44  ;;  %653 = vmatpush.msra.mxu3 %v579_v45 }
  0xd4   : > { %634 = vmatpush.msra.mxu2 %v1469_v0  ;;  %654 = vmatpush.msra.mxu3 %v1474_v1 }
  0xd6   : > { %v548_v52 = vpop.permute.xlu1 %547  ;;  %v561_v53 = vpop.permute.xlu0 %560 }
  0xd7   : > { %v563_v54 = vsel %vm562_vm5, %v559_v30, %v561_v53  ;;  %v564_v55 = vsel %vm562_vm5, %v561_v53, %v559_v30  ;;  %v552_v56 = vsel %vm551_vm6, %v548_v52, %v550_v49  ;;  %v553_v57 = vsel %vm551_vm6, %v550_v49, %v548_v52 }
  0xd8   : > { %v567_v58 = vmul.f32 %v565_v47, %v564_v55  ;;  %v568_v59 = vmul.f32 %v566_v48, %v563_v54  ;;  %v556_v60 = vmul.f32 %v554_v50, %v553_v57  ;;  %v557_v61 = vmul.f32 %v555_v51, %v552_v56 }
  0xd9   : > { %v1549_v49 = vadd.f32 %v499_v42, %v476_v41  ;;  %v1551_v53 = vadd.f32 %v519_v46, %v476_v41  ;;  %v705_v42 = vld [vmem:[%s1644_s7] sm:$0xff] }
  0xda   : > { %635 = vmatpush.msra.mxu2 %v567_v58  ;;  %655 = vmatpush.msra.mxu3 %v568_v59 }
  0xdc   : > { %636 = vmatpush.msra.mxu2 %v556_v60  ;;  %656 = vmatpush.msra.mxu3 %v557_v61  ;;  %v469_v60 = vld [vmem:[#allocation7 + $0x20] sm:$0x3]  ;;  %v470_v61 = vld [vmem:[#allocation7 + $0x28] sm:$0x3] }
  0xde   : > { %v539_v2 = vpop.permute.xlu1 %538  ;;  %v537_v3 = vpop.permute.xlu0 %536 }
  0xdf   : > { %v541_v4 = vsel %vm540_vm7, %v537_v3, %v539_v2  ;;  %v542_v5 = vsel %vm540_vm7, %v539_v2, %v537_v3 }
  0xe0   : > { %v545_v9 = vmul.f32 %v543_v62, %v542_v5  ;;  %v546_v12 = vmul.f32 %v544_v63, %v541_v4  ;;  %v748_v62 = vperm.slane %v469_v60, 1  ;;  %v749_v63 = vperm.slane %v470_v61, 1 }
  0xe1   : > { %v744_v4 = vperm.slane %v469_v60, 0  ;;  %v745_v5 = vperm.slane %v470_v61, 0 }
  0xe2   : > { %637 = vmatpush.msra.mxu2 %v545_v9  ;;  %657 = vmatpush.msra.mxu3 %v546_v12 }
  0xe6   : > { %v526_v16 = vpop.permute.xlu0 %525  ;;  %v617_v22 = vpop.permute.xlu1 %616 }
  0xe7   : > { %v530_v17 = vsel %vm529_vm8, %v524_v13, %v526_v16  ;;  %v531_v18 = vsel %vm529_vm8, %v526_v16, %v524_v13 }
  0xe8   : > { %v534_v19 = vmul.f32 %v532_v14, %v531_v18  ;;  %v535_v20 = vmul.f32 %v533_v15, %v530_v17  ;;  %v740_v17 = vperm.slane %v1491_v7, 7  ;;  %v741_v18 = vperm.slane %v1493_v8, 7 }
  0xea   : > { %638 = vmatpush.msra.mxu2 %v534_v19  ;;  %658 = vmatpush.msra.mxu3 %v535_v20 }
  0xeb   : > { %991 = vmatmul.msk.f32.vlgmr.msra.gmra.mxu2 %vm619_vm9, %v522_v21  ;;  %992 = vmatmul.msk.f32.vlgmr.msra.gmra.mxu3 %vm619_vm9, %v522_v21  ;;  %v736_v21 = vperm.slane %v1491_v7, 6 }
 0x16e   : > { %v640_v10 = vpop.f32.mrf.mxu2  ;;  %v660_v23 = vpop.f32.mrf.mxu3 }
 0x16f   : > { %v641_v11 = vadd.f32 %v640_v10, %v617_v22  ;;  %v661_v24 = vadd.f32 %v660_v23, %v617_v22  ;;  %v737_v22 = vperm.slane %v1493_v8, 6 }
 0x171   : > { %v993_v25 = vmul.f32 -1.442695, %v641_v11  ;;  %v994_v26 = vmul.f32 -1.442695, %v661_v24 }
 0x173   : > { %1085 = vpow2.f32 %v993_v25 }
 0x174   : > { %1087 = vpow2.f32 %v994_v26  ;;  %v732_v26 = vperm.slane %v1491_v7, 4 }
 0x179   : > { %v1086_v27 = vpop.eup %1085 }
 0x17a   : > { %v1088_v28 = vpop.eup %1087  ;;  %v669_v29 = vadd.f32 1.0, %v1086_v27  ;;  %v733_v27 = vperm.slane %v1493_v8, 4 }
 0x17b   : > { %v670_v30 = vadd.f32 1.0, %v1088_v28  ;;  %v728_v28 = vperm.slane %v1491_v7, 3 }
 0x17c   : > { %1089 = vrcp.f32 %v669_v29  ;;  %v682_v36 = vand.u32 2147483648, %v669_v29  ;;  %v680_v39 = vand.u32 2147483647, %v669_v29  ;;  %vm676_vm12 = vweird.f32 %v669_v29 }
 0x17d   : > { %1091 = vrcp.f32 %v670_v30  ;;  %v697_v40 = vand.u32 2147483648, %v670_v30  ;;  %v695_v44 = vand.u32 2147483647, %v670_v30  ;;  %vm691_vm14 = vweird.f32 %v670_v30 }
 0x17e   : > { %v683_v47 = vor.u32 1.1754944e-38, %v682_v36  ;;  %vm681_vm15 = vcmp.eq.f32.partialorder %v680_v39, 8.507059e+37  ;;  %v713_v36 = vperm.slane %v1491_v7, 1 }
 0x17f   : > { %v698_v51 = vor.u32 1.1754944e-38, %v697_v40  ;;  %vm696_vm1 = vcmp.eq.f32.partialorder %v695_v44, 8.507059e+37 }
 0x182   : > { %v1090_v31 = vpop.eup %1089 }
 0x183   : > { %v1092_v32 = vpop.eup %1091  ;;  %v672_v33 = vmul.f32 %v1090_v31, %v669_v29  ;;  %vm677_vm10 = vweird.f32 %v1090_v31  ;;  %v729_v29 = vperm.slane %v1493_v8, 3 }
 0x184   : > { %v687_v34 = vmul.f32 %v1092_v32, %v670_v30  ;;  %vm692_vm11 = vweird.f32 %v1092_v32  ;;  %vm678_vm13 = vmor %vm676_vm12, %vm677_vm10 }
 0x185   : > { %v673_v35 = vsub.f32 1.0, %v672_v33  ;;  %vm693_vm0 = vmor %vm691_vm14, %vm692_vm11  ;;  %v718_v33 = vperm.slane %v1493_v8, 2 }
 0x186   : > { %v688_v37 = vsub.f32 1.0, %v687_v34 }
 0x187   : > { %v674_v38 = vmul.f32 %v1090_v31, %v673_v35 }
 0x188   : > { %v689_v43 = vmul.f32 %v1092_v32, %v688_v37  ;;  %v714_v37 = vperm.slane %v1493_v8, 1 }
 0x189   : > { %v675_v45 = vadd.f32 %v1090_v31, %v674_v38 }
 0x18a   : > { %v690_v48 = vadd.f32 %v1092_v32, %v689_v43 }
 0x18b   : > { %v679_v50 = vsel %vm678_vm13, %v1090_v31, %v675_v45 }
 0x18c   : > { %v684_v52 = vsel %vm681_vm15, %v683_v47, %v679_v50  ;;  %v694_v54 = vsel %vm693_vm0, %v1092_v32, %v690_v48  ;;  %v717_v32 = vperm.slane %v1491_v7, 2  ;;  %v803_v48 = vld [vmem:[%s1675_s29] sm:$0xff] }
 0x18d   : > { %v701_v55 = vmul.f32 %v684_v52, %v1469_v0  ;;  %v699_v56 = vsel %vm696_vm1, %v698_v51, %v694_v54  ;;  %v804_v0 = vld [vmem:[%s1647_s10] sm:$0xff] }
 0x18e   : > { %v702_v57 = vmul.f32 %v699_v56, %v1474_v1  ;;  %v752_v1 = vld [vmem:[%s1645_s8] sm:$0xff] }
 0x18f   : > { %v1556_v58 = vadd.f32 %v701_v55, %v1549_v49 }
 0x190   : > { %v1559_v59 = vadd.f32 %v702_v57, %v1551_v53 }
 0x191   : > { %706 = vrot.lane.b32.xlu2 %v1556_v58, %s1271_s20  ;;  %721 = vrot.lane.b32.xlu0 %v1556_v58, %s1272_s25  ;;  %v747_v16 = vmul.f32 %v745_v5, %v1556_v58  ;;  %v720_v39 = vmul.f32 %v718_v33, %v1556_v58 }
 0x192   : > { %723 = vrot.lane.b32.xlu1 %v1559_v59, %s1272_s25  ;;  %v746_v15 = vmul.f32 %v744_v4, %v1559_v59  ;;  %v719_v38 = vmul.f32 %v717_v32, %v1559_v59  ;;  %s871_s25 = sshll.u32 %s867_s22, 4  ;;  %s872_s25 = int_to_ptr.hbm [resolvable:$true] %s871_s25 }
 0x193   : > { %s1197_s30 = sshra.s32 %s872_s25, 4  ;;  %s1198_s30 = int_to_ptr.hbm [resolvable:$true] %s1197_s30 }
 0x194   : > { %s1199_s24 = scalar_lea.hbm %s1198_s30, 16  ;;  %p1204_p7 = scmp.lt.s32.totalorder %s1198_s30, %s1676_s2 }
 0x195   : > { %p1200_p1 = scmp.ne.s32.totalorder %s1198_s30, %s1199_s24  ;;  %p1205_p9 = scmp.lt.s32.totalorder %s1203_s21, %s1199_s24 }
 0x197   : > { %p1201_p3 = pnand %p1200_p1, %p1397_p0  ;;  %p1206_p8 = por %p1205_p9, %p1204_p7 }
 0x199   : > { %807 = vperm.xlu2 %1083, %v804_v0   ;;  %708 = vrot.lane.b32.xlu0 %v1559_v59, %s1271_s20  ;;  %s869_s20 = sshll.u32 %s460_s26, 4  ;;  %p1202_p13 = pneg %p1201_p3  ;;  %s870_s20 = int_to_ptr.vmem [resolvable:$true] %s869_s20 }
 0x19a   : > { %755 = vperm.xlu1 %1082, %v752_v1  }
 0x19b   : > { %p1207_p10 = pnand %p1206_p8, %p1202_p13 }
 0x1eb   : > { %v707_v19 = vpop.permute.xlu2 %706 }
 0x1f3   : > { %v808_v50 = vpop.permute.xlu2 %807 }
 0x203   : > { %v722_v2 = vpop.permute.xlu0 %721 }
 0x204   : > { %v724_v3 = vpop.permute.xlu1 %723 }
 0x205   : > { %v726_v9 = vsel %vm725_vm2, %v722_v2, %v724_v3  ;;  %v727_v12 = vsel %vm725_vm2, %v724_v3, %v722_v2 }
 0x206   : > { %v750_v13 = vmul.f32 %v748_v62, %v727_v12  ;;  %v751_v14 = vmul.f32 %v749_v63, %v726_v9  ;;  %v738_v25 = vmul.f32 %v736_v21, %v726_v9  ;;  %v739_v6 = vmul.f32 %v737_v22, %v727_v12 }
 0x207   : > { %v730_v34 = vmul.f32 %v728_v28, %v727_v12  ;;  %v731_v35 = vmul.f32 %v729_v29, %v726_v9 }
 0x208   : > { %768 = vmatpush.msrb.mxu0 %v750_v13  ;;  %788 = vmatpush.msrb.mxu1 %v751_v14 }
 0x20a   : > { %769 = vmatpush.msrb.mxu0 %v746_v15  ;;  %789 = vmatpush.msrb.mxu1 %v747_v16 }
 0x20b   : > { %v709_v20 = vpop.permute.xlu0 %708 }
 0x20c   : > { %v711_v10 = vsel %vm710_vm3, %v707_v19, %v709_v20  ;;  %v712_v23 = vsel %vm710_vm3, %v709_v20, %v707_v19  ;;  %v756_v7 = vpop.permute.xlu1 %755 }
 0x20d   : > { %v742_v11 = vmul.f32 %v740_v17, %v711_v10  ;;  %v743_v24 = vmul.f32 %v741_v18, %v712_v23  ;;  %v734_v30 = vmul.f32 %v732_v26, %v712_v23  ;;  %v735_v31 = vmul.f32 %v733_v27, %v711_v10 }
 0x20e   : > { %v715_v40 = vmul.f32 %v713_v36, %v711_v10  ;;  %v716_v41 = vmul.f32 %v714_v37, %v712_v23 }
 0x20f   : > { %770 = vmatpush.msrb.mxu0 %v742_v11  ;;  %790 = vmatpush.msrb.mxu1 %v743_v24 }
 0x211   : > { %771 = vmatpush.msrb.mxu0 %v738_v25  ;;  %791 = vmatpush.msrb.mxu1 %v739_v6 }
 0x213   : > { %772 = vmatpush.msrb.mxu0 %v1556_v58  ;;  %792 = vmatpush.msrb.mxu1 %v1559_v59 }
 0x215   : > { %773 = vmatpush.msrb.mxu0 %v734_v30  ;;  %793 = vmatpush.msrb.mxu1 %v735_v31 }
 0x217   : > { %774 = vmatpush.msrb.mxu0 %v730_v34  ;;  %794 = vmatpush.msrb.mxu1 %v731_v35 }
 0x219   : > { %775 = vmatpush.msrb.mxu0 %v719_v38  ;;  %795 = vmatpush.msrb.mxu1 %v720_v39 }
 0x21b   : > { %776 = vmatpush.msrb.mxu0 %v715_v40  ;;  %796 = vmatpush.msrb.mxu1 %v716_v41 }
 0x21c   : > { %995 = vmatmul.msk.f32.vlgmr.msrb.gmra.mxu0 %vm619_vm9, %v705_v42  ;;  %996 = vmatmul.msk.f32.vlgmr.msrb.gmra.mxu1 %vm619_vm9, %v705_v42 }
 0x299   : > { %v778_v8 = vpop.f32.mrf.mxu0  ;;  %v798_v43 = vpop.f32.mrf.mxu1 }
 0x29a   : > { %v779_v44 = vadd.f32 %v778_v8, %v756_v7  ;;  %v799_v45 = vadd.f32 %v798_v43, %v756_v7 }
 0x29c   : > { %v801_v46 = vadd.f32 %v779_v44, %v1549_v49  ;;  %v802_v47 = vadd.f32 %v799_v45, %v1551_v53 }
 0x29e   : > { %828 = vmatpush.msrb.mxu2 %v801_v46  ;;  %848 = vmatpush.msrb.mxu3 %v802_v47 }
 0x29f   : > { %997 = vmatmul.msk.f32.vlgmr.msrb.gmra.mxu2 %vm478_vm4, %v803_v48  ;;  %998 = vmatmul.msk.f32.vlgmr.msrb.gmra.mxu3 %vm478_vm4, %v803_v48 }
 0x322   : > { %v830_v49 = vpop.f32.mrf.mxu2  ;;  %v850_v51 = vpop.f32.mrf.mxu3 }
 0x323   : > { %v831_v52 = vadd.f32 %v830_v49, %v808_v50  ;;  %v851_v53 = vadd.f32 %v850_v51, %v808_v50 }
 0x325   : > { %853 = vst [vmem:[%s460_s26] sm:$0xff] %v831_v52 }
 0x326   : > { %854 = vst [vmem:[%s460_s26 + $0x8] sm:$0xff] %v851_v53 }
 0x327   : > { %1210 = shalt.err (!%p1207_p10)
}
 0x328   : > { %1015 = dma.vmem_to_hbm [thread:$0]  (%p1397_p0), %s870_s20, 256, %s872_s25, %s856_s27  }
 0x329 PF: > { %s1678_s11 = sld [smem:[#allocation13_spill]] }
 0x32a   : > { %s1680_s16 = sld [smem:[#allocation15_spill]] }
 0x32f   : > { %s883_s29 = sand.u32 1, %s1678_s11  }
 0x330   : > { %p1681_p12 = scmp.ge.s32.totalorder %s1680_s16, 2  ;;  %s884_s13 = scalar_lea.sflag [#allocation4], %s883_s29 }
 0x332   : > { %p1029_p5 = pnand %p1681_p12, %p1403_p6 }
 0x334   : > { %p1030_p11 = pneg %p1029_p5 }
 0x336   : > { %1240 = dma.done.wait (%p1030_p11), %s884_s13, 256  }
 0x337   : > { %1242 = vsyncadd (%p1030_p11), %s884_s13, 4294967040  ;;  %s1682_s20 = sld [smem:[#allocation16_spill]]  ;;  %s1685_s17 = smov %s1249_s18 }
 0x338   : > { %s1683_s14 = sld [smem:[#allocation14_spill]] }
 0x339   : > { %s1684_s19 = sld [smem:[#allocation17_spill]] }
 0x33d   : > { %p27_p2 = scmp.ge.s32.totalorder %s1682_s20, 4  }
 0x33e   : > { %s1686_s18 = smov %s1683_s14 }
 0x33f   :  { %29 = sbr.rel (!%p27_p2) target bundleno = 11 (0xb), region = 126 }
 0x344   :  { %890 = vsyncpa [#allocation3], 1 }
 0x345   :  { %892 = vsyncpa [#allocation3 + $0x1], 1 }
 0x346   :  { %893 = vsyncpa [#allocation6], 1 }
 0x347   :  { %895 = vsyncpa [#allocation6 + $0x1], 1 }
 0x348   :  { %896 = vsyncpa [#allocation4], 1 }
 0x349   :  { %898 = vsyncpa [#allocation4 + $0x1], 1 }

</bundles_post_ra>
